<compile_context>
chip_gen: v5e
topology: v5e:2x2
jax: 0.10.0
libtpu: 0.0.40
codegen_flags: <defaults>
</compile_context>

<pallas_src>
import jax
import jax.numpy as jnp
from jax.experimental import pallas as pl
from jax.experimental.pallas import tpu as pltpu

KH = KW = 3  # conv kernel size (padding=1, stride=1)


def block_kernel(x_ref, m_ref, bias_ref, o_ref):
    """Fused Conv2d(3x3, pad=1) + folded BatchNorm(eval) + ReLU.

    x_ref:    (Nb, H, KH*W*Cin)   bf16 im2col'd (along H) lane-packed input
    m_ref:    (KH*W*Cin, W*Cout)  bf16 block-Toeplitz conv weights (BN folded)
    bias_ref: (1, W*Cout)         f32 folded BN/conv bias, tiled over W
    o_ref:    (Nb, H, W*Cout)     lane-dense output
    """
    nb, h, k = x_ref.shape
    wcout = o_ref.shape[2]

    # Leading-dim merge only -> no lane/sublane relayout.
    lhs = x_ref[...].reshape(nb * h, k)
    # Single MXU pass: K=192 contraction, bf16 operands, f32 accumulation.
    acc = jnp.dot(lhs, m_ref[...], preferred_element_type=jnp.float32)
    y = jnp.maximum(acc + bias_ref[0, :], 0.0)
    o_ref[...] = y.reshape(nb, h, wcout).astype(o_ref.dtype)


def _pick_batch_block(n, h, *, target_rows=512, max_nb=64):
    """Pick (Nb, grid) so Nb*h ~ target_rows MXU rows, per-step DMAs are a few
    hundred KB, and the grid length is even when > 1 (v7x 2-TC split).
    The caller pads N up to Nb*grid."""
    desired = max(1, min(max_nb, (target_rows + h - 1) // h))
    nb = min(desired, n)
    grid = (n + nb - 1) // nb
    if grid > 1 and grid % 2 == 1:
        grid += 1
    return nb, grid


def block_forward(x, w, b, gamma, beta, mean, var, eps=1e-5):
    """x: [T, B, Cin, H, W] (PyTorch layout).  Returns [T, B, Cout, H, W]."""
    T, B, Cin, H, W = x.shape
    Cout = w.shape[0]
    N = T * B
    Nb, grid = _pick_batch_block(N, H)
    N_pad = Nb * grid

    # _Twrapper: flatten (T, B) -> N; NCHW -> NHWC; halo-pad H by 1; im2col
    # the KH taps along H so the kernel sees a single K = KH*W*Cin contraction.
    xf = x.reshape(N, Cin, H, W)
    if N_pad != N:
        xf = jnp.pad(xf, ((0, N_pad - N), (0, 0), (0, 0), (0, 0)))
    x_nhwc = jnp.transpose(xf, (0, 2, 3, 1))                     # (Np, H, W, Cin)
    x_hpad = jnp.pad(x_nhwc, ((0, 0), (1, 1), (0, 0), (0, 0)))   # (Np, H+2, W, Cin)
    x_im2col = jnp.stack([x_hpad[:, dh:dh + H] for dh in range(KH)],
                         axis=2)                                 # (Np, H, KH, W, Cin)
    x_packed = x_im2col.reshape(N_pad, H, KH * W * Cin).astype(jnp.bfloat16)

    # Fold BatchNorm (eval mode) into conv weights / bias.
    scale = gamma / jnp.sqrt(var + eps)                          # (Cout,)
    bias = (b - mean) * scale + beta                             # (Cout,)
    w_hwio = jnp.transpose(w, (2, 3, 1, 0))                      # (KH, KW, Cin, Cout)
    w_folded = w_hwio * scale[None, None, None, :]

    # Block-Toeplitz conv matrix: for each dh tap,
    #   M[dh, w_in*Cin + ci, w_out*Cout + co] = w_folded[dh, w_in-w_out+1, ci, co]
    # (zero when the dw tap falls outside [0, KW) or w_in outside [0, W) --
    #  this implements the zero padding along W).  The KH taps are stacked
    #  along K to match the im2col'd LHS row layout.
    q = jnp.arange(W)        # output column
    k = jnp.arange(KW)       # dw tap
    p = jnp.arange(W)        # input column
    onehot = (q[None, :, None] + k[:, None, None] - 1
              == p[None, None, :]).astype(jnp.float32)           # (KW, W, W)
    m = jnp.einsum('kqp,hkio->hpiqo', onehot, w_folded)          # (KH, W, Cin, W, Cout)
    m = m.reshape(KH * W * Cin, W * Cout).astype(jnp.bfloat16)

    bias_packed = jnp.tile(bias, W).reshape(1, W * Cout).astype(jnp.float32)

    # Note: m / bias have constant index maps; default double buffering wastes
    # one redundant ~48 KB weight buffer, negligible at this size.
    out_packed = pl.pallas_call(
        block_kernel,
        out_shape=jax.ShapeDtypeStruct((N_pad, H, W * Cout), x.dtype),
        grid_spec=pltpu.PrefetchScalarGridSpec(
            num_scalar_prefetch=0,
            grid=(grid,),
            in_specs=[
                pl.BlockSpec((Nb, H, KH * W * Cin), lambda n: (n, 0, 0)),
                pl.BlockSpec((KH * W * Cin, W * Cout), lambda n: (0, 0)),
                pl.BlockSpec((1, W * Cout), lambda n: (0, 0)),
            ],
            out_specs=pl.BlockSpec((Nb, H, W * Cout), lambda n: (n, 0, 0)),
        ),
        compiler_params=pltpu.CompilerParams(
            dimension_semantics=("parallel",)),
    )(x_packed, m, bias_packed)

    # Drop batch padding, un-pack lanes, restore [T, B, Cout, H, W].
    out = out_packed[:N].reshape(N, H, W, Cout)
    out = jnp.transpose(out, (0, 3, 1, 2)).reshape(T, B, Cout, H, W)
    return out


def reference_forward(x, w, b, gamma, beta, mean, var, eps=1e-5):
    """Pure-JAX f32 reference mirroring the PyTorch forward exactly."""
    T, B, Cin, H, W = x.shape
    xf = x.reshape(T * B, Cin, H, W)
    y = jax.lax.conv_general_dilated(
        xf, w, window_strides=(1, 1), padding="SAME",
        dimension_numbers=("NCHW", "OIHW", "NCHW"))
    y = y + b[None, :, None, None]
    y = gamma[None, :, None, None] * (y - mean[None, :, None, None]) / \
        jnp.sqrt(var[None, :, None, None] + eps) + beta[None, :, None, None]
    y = jnp.maximum(y, 0.0)
    return y.reshape(T, B, -1, H, W)


if __name__ == "__main__":
    T, B, Cin, Cout, H, W = 2, 2, 4, 8, 16, 16

    key = jax.random.PRNGKey(0)
    kx, kw, kb, kg, kbe, km, kv = jax.random.split(key, 7)

    x = jax.random.normal(kx, (T, B, Cin, H, W), dtype=jnp.float32)

    # Deterministic synthetic parameters (Conv2d + BatchNorm2d running stats).
    w = 0.1 * jax.random.normal(kw, (Cout, Cin, KH, KW), dtype=jnp.float32)
    b = 0.05 * jax.random.normal(kb, (Cout,), dtype=jnp.float32)
    gamma = 1.0 + 0.1 * jax.random.normal(kg, (Cout,), dtype=jnp.float32)
    beta = 0.1 * jax.random.normal(kbe, (Cout,), dtype=jnp.float32)
    mean = 0.1 * jax.random.normal(km, (Cout,), dtype=jnp.float32)
    var = jnp.abs(1.0 + 0.1 * jax.random.normal(kv, (Cout,), dtype=jnp.float32))

    out = block_forward(x, w, b, gamma, beta, mean, var)
    out = jax.block_until_ready(out)

    ref = jax.block_until_ready(reference_forward(x, w, b, gamma, beta, mean, var))
    assert out.shape == (T, B, Cout, H, W)
    # bf16 MXU operands (f32 accumulation) -> relaxed tolerance vs f32 ref.
    max_err = float(jnp.max(jnp.abs(out - ref)))
    assert jnp.allclose(out, ref, atol=3e-2, rtol=3e-2), max_err

    print("KERNEL_OK")
</pallas_src>

<mosaic_0001>
module attributes {stable_mosaic.version = 11 : i64} {
  func.func @block_kernel(%arg0: i32, %arg1: memref<4x16x192xbf16, #tpu.memory_space<vmem>>, %arg2: memref<192x128xbf16, #tpu.memory_space<vmem>>, %arg3: memref<1x128xf32, #tpu.memory_space<vmem>>, %arg4: memref<4x16x128xf32, #tpu.memory_space<vmem>>) attributes {dimension_semantics = [#tpu.dimension_semantics<parallel>], iteration_bounds = array<i64: 1>, scalar_prefetch = 0 : i64, scratch_operands = 0 : i64, tpu.core_type = #tpu.core_type<tc>, window_params = [{transform_indices = @transform_0, window_bounds = array<i64: 4, 16, 192>}, {pipeline_mode = #tpu.pipeline_mode<synchronous>, transform_indices = @transform_1, window_bounds = array<i64: 192, 128>}, {pipeline_mode = #tpu.pipeline_mode<synchronous>, transform_indices = @transform_2, window_bounds = array<i64: 1, 128>}, {transform_indices = @transform_3, window_bounds = array<i64: 4, 16, 128>}]} {
    %c0 = arith.constant 0 : index
    %c0_0 = arith.constant 0 : index
    %c0_1 = arith.constant 0 : index
    %0 = vector.load %arg1[%c0, %c0_0, %c0_1] : memref<4x16x192xbf16, #tpu.memory_space<vmem>>, vector<4x16x192xbf16>
    %1 = vector.shape_cast %0 : vector<4x16x192xbf16> to vector<64x192xbf16>
    %c0_2 = arith.constant 0 : index
    %c0_3 = arith.constant 0 : index
    %2 = vector.load %arg2[%c0_2, %c0_3] : memref<192x128xbf16, #tpu.memory_space<vmem>>, vector<192x128xbf16>
    %cst = arith.constant dense<0.000000e+00> : vector<64x128xf32>
    %3 = tpu.matmul %1, %2, %cst {dimension_numbers = #tpu.dot_dimension_numbers<[1], [0], [0], [1], [0, 0, 1, 1], [], []>} : vector<64x192xbf16>, vector<192x128xbf16>, vector<64x128xf32> -> vector<64x128xf32>
    %c0_4 = arith.constant 0 : index
    %c0_5 = arith.constant 0 : index
    %4 = vector.load %arg3[%c0_4, %c0_5] : memref<1x128xf32, #tpu.memory_space<vmem>>, vector<1x128xf32>
    %5 = vector.shape_cast %4 : vector<1x128xf32> to vector<128xf32>
    %6 = vector.shape_cast %5 : vector<128xf32> to vector<1x128xf32>
    %7 = vector.broadcast %6 : vector<1x128xf32> to vector<64x128xf32>
    %8 = arith.addf %3, %7 : vector<64x128xf32>
    %cst_6 = arith.constant 0.000000e+00 : f32
    %9 = vector.broadcast %cst_6 : f32 to vector<64x128xf32>
    %10 = arith.maximumf %8, %9 : vector<64x128xf32>
    %11 = vector.shape_cast %10 : vector<64x128xf32> to vector<4x16x128xf32>
    %c0_7 = arith.constant 0 : index
    %c0_8 = arith.constant 0 : index
    %c0_9 = arith.constant 0 : index
    %12 = vector.load %arg4[%c0_7, %c0_8, %c0_9] : memref<4x16x128xf32, #tpu.memory_space<vmem>>, vector<4x16x128xf32>
    tpu.vector_store %arg4[%c0_7, %c0_8, %c0_9], %11 {strides = array<i32>} : memref<4x16x128xf32, #tpu.memory_space<vmem>>, vector<4x16x128xf32>,
    return
  }
  func.func @transform_0(%arg0: i32) -> (i32, i32, i32) {
    %c0_i32 = arith.constant 0 : i32
    %c0_i32_0 = arith.constant 0 : i32
    %c0_i32_1 = arith.constant 0 : i32
    return %arg0, %c0_i32, %c0_i32_0 : i32, i32, i32
  }
  func.func @transform_1(%arg0: i32) -> (i32, i32) {
    %c0_i32 = arith.constant 0 : i32
    %c0_i32_0 = arith.constant 0 : i32
    %c0_i32_1 = arith.constant 0 : i32
    return %c0_i32, %c0_i32_0 : i32, i32
  }
  func.func @transform_2(%arg0: i32) -> (i32, i32) {
    %c0_i32 = arith.constant 0 : i32
    %c0_i32_0 = arith.constant 0 : i32
    %c0_i32_1 = arith.constant 0 : i32
    return %c0_i32, %c0_i32_0 : i32, i32
  }
  func.func @transform_3(%arg0: i32) -> (i32, i32, i32) {
    %c0_i32 = arith.constant 0 : i32
    %c0_i32_0 = arith.constant 0 : i32
    %c0_i32_1 = arith.constant 0 : i32
    return %arg0, %c0_i32, %c0_i32_0 : i32, i32, i32
  }
}

</mosaic_0001>

<bundles_post_ra>
// kernel: tpu_custom_call.1
= control target key start
LH: loop header
LB: loop body
LE: loop exit
PB: predicated region body
PF: predicated region fallthrough
CT: control target
= control target key end

     0   :  { %8 = vsyncpa [#allocation3], 0  ;;  %s550_s0 = inlined_call_operand.hbm [shape: bf16[4,16,192], index: 0, kind: input, shape index: {}]   ;;  %s551_s1 = inlined_call_operand.hbm [shape: bf16[192,128], index: 1, kind: input, shape index: {}]   ;;  %s552_s2 = inlined_call_operand.vmem [shape: f32[1,128], index: 2, kind: input, shape index: {}]   ;;  %s553_s3 = inlined_call_operand.hbm [shape: f32[4,16,128], index: 3, kind: output, shape index: {}]  }
   0x1   :  { %9 = vsyncpa [#allocation6], 0 }
   0x2   :  { %10 = vsyncpa [#allocation4], 0  ;;  %s15_s14 = sshll.u32 %s550_s0, 4  ;;  %s501_s15 = smov [#allocation2]   ;;  %s16_s14 = int_to_ptr.hbm [resolvable:$true] %s15_s14 }
   0x3   :  { %s17_s16 = sshll.u32 %s501_s15, 4  ;;  %s28_s19 = sshll.u32 %s551_s1, 4  ;;  %s18_s16 = int_to_ptr.vmem [resolvable:$true] %s17_s16  ;;  %s29_s19 = int_to_ptr.hbm [resolvable:$true] %s28_s19 }
   0x4   :  { %s502_s20 = smov 128   ;;  %s503_s21 = smov 8  }
   0x5   :  { %23 = dma.hbm_to_vmem [thread:$0]  %s16_s14, 1024, %s18_s16, [#allocation3], %s502_s20, %s502_s20, %s503_s21  }
   0x6   :  { %s504_s22 = smov [#allocation5]   ;;  %s505_s24 = smov 64  }
   0x7   :  { %s30_s23 = sshll.u32 %s504_s22, 4  ;;  %s506_s0 = smov 4   ;;  %s31_s23 = int_to_ptr.vmem [resolvable:$true] %s30_s23 }
   0x8   :  { %36 = dma.hbm_to_vmem [thread:$0]  %s29_s19, 1536, %s31_s23, [#allocation6], %s505_s24, %s505_s24, %s506_s0  }
   0x9   :  { %495 = dma.done.wait [#allocation3], 1024  }
   0xa   :  { %496 = vsyncadd [#allocation3], 4294966272 }
   0xb   :  { %497 = dma.done.wait [#allocation6], 1536  }
   0xc   :  { %498 = vsyncadd [#allocation6], 4294965760  ;;  %v398_v0 = vld [vmem:[#allocation5 + $0x38] sm:$0xff]  ;;  %v397_v2 = vld [vmem:[#allocation5 + $0x30] sm:$0xff]  ;;  %vm192_vm0 = vcmask 523264   ;;  %s285_s29 = sshll.u32 %s553_s3, 4  ;;  %s286_s29 = int_to_ptr.hbm [resolvable:$true] %s285_s29 }
   0xd   :  { %v402_v1 = vld [vmem:[#allocation5 + $0x58] sm:$0xff]  ;;  %205 = vmatpush.bf16.msra.mxu0 %v398_v0  ;;  %403 = vmatpush.bf16.msra.mxu2 %v398_v0  ;;  %v401_v3 = vld [vmem:[#allocation5 + $0x50] sm:$0xff]  ;;  %v396_v4 = vld [vmem:[#allocation5 + $0x28] sm:$0xff] }
   0xe   :  { %411 = vmatpush.bf16.msra.mxu3 %v402_v1  ;;  %238 = vmatpush.bf16.msra.mxu1 %v402_v1  ;;  %v400_v5 = vld [vmem:[#allocation5 + $0x48] sm:$0xff]  ;;  %v395_v6 = vld [vmem:[#allocation5 + $0x20] sm:$0xff]  ;;  %v385_v8 = vld [vmem:[#allocation2 + $0x14] sm:$0xf] }
   0xf   :  { %v399_v7 = vld [vmem:[#allocation5 + $0x40] sm:$0xff]  ;;  %v311_v9 = vld [vmem:[#allocation2 + $0x18] sm:$0xf0]  ;;  %v303_v11 = vld [vmem:[#allocation2 + $0x8] sm:$0xf0] }
  0x10   :  { %v383_v10 = vld [vmem:[#allocation2 + $0x4] sm:$0xf]  ;;  %v314_v12 = vor.u32 %v385_v8, %v311_v9  ;;  %v394_v13 = vld [vmem:[#allocation5 + $0x18] sm:$0xff]  ;;  %v393_v15 = vld [vmem:[#allocation5 + $0x10] sm:$0xff] }
  0x11   :  { %206 = vmatpush.bf16.msra.mxu0 %v397_v2  ;;  %404 = vmatpush.bf16.msra.mxu2 %v397_v2  ;;  %v306_v14 = vor.u32 %v383_v10, %v303_v11  ;;  %v392_v16 = vld [vmem:[#allocation5 + $0x8] sm:$0xff]  ;;  %v391_v17 = vld [vmem:[#allocation5] sm:$0xff]  ;;  %v309_v27 = vld [vmem:[#allocation2 + $0x10] sm:$0xf] }
  0x12   :  { %412 = vmatpush.bf16.msra.mxu3 %v401_v3  ;;  %239 = vmatpush.bf16.msra.mxu1 %v401_v3  ;;  %v301_v18 = vld [vmem:[#allocation2] sm:$0xf]  ;;  %v384_v19 = vld [vmem:[#allocation2 + $0x4] sm:$0xf0]  ;;  %v387_v22 = vld [vmem:[#allocation2 + $0x24] sm:$0xf] }
  0x13   :  { %v317_v20 = vld [vmem:[#allocation2 + $0x20] sm:$0xf]  ;;  %v388_v21 = vld [vmem:[#allocation2 + $0x24] sm:$0xf0]  ;;  %v319_v23 = vld [vmem:[#allocation2 + $0x28] sm:$0xf0]  ;;  %v302_v24 = vor.u32 %v384_v19, %v301_v18 }
  0x14   :  { %v318_v25 = vor.u32 %v388_v21, %v317_v20  ;;  %v322_v26 = vor.u32 %v387_v22, %v319_v23  ;;  %v386_v28 = vld [vmem:[#allocation2 + $0x14] sm:$0xf0]  ;;  %v325_v29 = vld [vmem:[#allocation2 + $0x30] sm:$0xf]  ;;  %v389_v31 = vld [vmem:[#allocation2 + $0x34] sm:$0xf] }
  0x15   :  { %207 = vmatpush.bf16.msra.mxu0 %v396_v4  ;;  %405 = vmatpush.bf16.msra.mxu2 %v396_v4  ;;  %v390_v30 = vld [vmem:[#allocation2 + $0x34] sm:$0xf0]  ;;  %v327_v32 = vld [vmem:[#allocation2 + $0x38] sm:$0xf0]  ;;  %v310_v33 = vor.u32 %v386_v28, %v309_v27  ;;  %v422_v37 = vld [vmem:[%s552_s2] ss:$0 sm:$0xff] }
  0x16   :  { %413 = vmatpush.bf16.msra.mxu3 %v400_v5  ;;  %240 = vmatpush.bf16.msra.mxu1 %v400_v5  ;;  %v326_v34 = vor.u32 %v390_v30, %v325_v29  ;;  %v330_v35 = vor.u32 %v389_v31, %v327_v32  ;;  %s507_s2 = smov [#allocation7]  }
  0x17   :  { %s283_s26 = sshll.u32 %s507_s2, 4  ;;  %s284_s26 = int_to_ptr.vmem [resolvable:$true] %s283_s26 }
  0x19   :  { %208 = vmatpush.bf16.msra.mxu0 %v395_v6  ;;  %406 = vmatpush.bf16.msra.mxu2 %v395_v6 }
  0x1a   :  { %414 = vmatpush.bf16.msra.mxu3 %v399_v7  ;;  %241 = vmatpush.bf16.msra.mxu1 %v399_v7 }
  0x1d   :  { %380 = vmatmul.msk.bf16.vlgmr.msra.gmra.mxu3 %vm192_vm0, %v314_v12  ;;  %209 = vmatpush.bf16.msra.mxu0 %v394_v13 }
  0x1e   :  { %407 = vmatpush.bf16.msra.mxu2 %v394_v13  ;;  %379 = vmatmul.msk.bf16.vlgmr.msra.gmra.mxu1 %vm192_vm0, %v306_v14 }
  0x21   :  { %210 = vmatpush.bf16.msra.mxu0 %v393_v15 }
  0x22   :  { %408 = vmatpush.bf16.msra.mxu2 %v393_v15 }
  0x25   :  { %211 = vmatpush.bf16.msra.mxu0 %v392_v16 }
  0x26   :  { %409 = vmatpush.bf16.msra.mxu2 %v392_v16 }
  0x29   :  { %212 = vmatpush.bf16.msra.mxu0 %v391_v17 }
  0x2a   :  { %410 = vmatpush.bf16.msra.mxu2 %v391_v17 }
  0x2c   :  { %213 = vmatmul.bf16.vlgmr.msra.gmra.mxu0 %v302_v24 }
  0x2d   :  { %223 = vmatmul.bf16.vlgmr.msra.gmra.mxu2 %v318_v25  ;;  %381 = vmatmul.msk.bf16.gmra.mxu3 %vm192_vm0, %v322_v26 }
  0x3c   :  { %218 = vmatmul.bf16.gmra.mxu0 %v310_v33 }
  0x3d   :  { %228 = vmatmul.bf16.gmra.mxu2 %v326_v34  ;;  %382 = vmatmul.msk.bf16.gmra.mxu3 %vm192_vm0, %v330_v35 }
  0x9b   :  { %v243_v38 = vpop.f32.mrf.mxu1 }
  0xa0   :  { %v248_v36 = vpop.f32.mrf.mxu3 }
  0xa3   :  { %v245_v48 = vpop.f32.mrf.mxu1 }
  0xa8   :  { %v250_v39 = vpop.f32.mrf.mxu3 }
  0xa9   :  { %v214_v40 = vpop.f32.mrf.mxu0 }
  0xaa   :  { %v215_v41 = vadd.f32 %v422_v37, %v214_v40 }
  0xac   :  { %v244_v42 = vadd.f32 %v243_v38, %v215_v41 }
  0xae   :  { %v263_v43 = vmax.f32 %v244_v42, 0.0 }
  0xb0   :  { %271 = vst [vmem:[#allocation7] sm:$0xff] %v263_v43  ;;  %v224_v44 = vpop.f32.mrf.mxu2  ;;  %v253_v45 = vpop.f32.mrf.mxu3 }
  0xb1   :  { %v225_v46 = vadd.f32 %v422_v37, %v224_v44  ;;  %v216_v47 = vpop.f32.mrf.mxu0 }
  0xb2   :  { %v217_v49 = vadd.f32 %v422_v37, %v216_v47 }
  0xb3   :  { %v254_v50 = vadd.f32 %v253_v45, %v225_v46 }
  0xb4   :  { %v246_v51 = vadd.f32 %v245_v48, %v217_v49 }
  0xb5   :  { %v267_v52 = vmax.f32 %v254_v50, 0.0 }
  0xb6   :  { %v264_v53 = vmax.f32 %v246_v51, 0.0 }
  0xb7   :  { %275 = vst [vmem:[#allocation7 + $0x20] sm:$0xff] %v267_v52 }
  0xb8   :  { %272 = vst [vmem:[#allocation7 + $0x8] sm:$0xff] %v264_v53  ;;  %v226_v54 = vpop.f32.mrf.mxu2  ;;  %v255_v55 = vpop.f32.mrf.mxu3 }
  0xb9   :  { %v227_v56 = vadd.f32 %v422_v37, %v226_v54  ;;  %v219_v57 = vpop.f32.mrf.mxu0 }
  0xba   :  { %v220_v58 = vadd.f32 %v422_v37, %v219_v57 }
  0xbb   :  { %v256_v59 = vadd.f32 %v255_v55, %v227_v56 }
  0xbc   :  { %v249_v60 = vadd.f32 %v248_v36, %v220_v58 }
  0xbd   :  { %v268_v61 = vmax.f32 %v256_v59, 0.0 }
  0xbe   :  { %v265_v62 = vmax.f32 %v249_v60, 0.0 }
  0xbf   :  { %276 = vst [vmem:[#allocation7 + $0x28] sm:$0xff] %v268_v61 }
  0xc0   :  { %273 = vst [vmem:[#allocation7 + $0x10] sm:$0xff] %v265_v62  ;;  %v229_v63 = vpop.f32.mrf.mxu2  ;;  %v258_v0 = vpop.f32.mrf.mxu3 }
  0xc1   :  { %v230_v1 = vadd.f32 %v422_v37, %v229_v63  ;;  %v221_v2 = vpop.f32.mrf.mxu0 }
  0xc2   :  { %v222_v3 = vadd.f32 %v422_v37, %v221_v2 }
  0xc3   :  { %v259_v4 = vadd.f32 %v258_v0, %v230_v1 }
  0xc4   :  { %v251_v5 = vadd.f32 %v250_v39, %v222_v3 }
  0xc5   :  { %v269_v6 = vmax.f32 %v259_v4, 0.0 }
  0xc6   :  { %v266_v7 = vmax.f32 %v251_v5, 0.0 }
  0xc7   :  { %277 = vst [vmem:[#allocation7 + $0x30] sm:$0xff] %v269_v6 }
  0xc8   :  { %274 = vst [vmem:[#allocation7 + $0x18] sm:$0xff] %v266_v7  ;;  %v231_v8 = vpop.f32.mrf.mxu2  ;;  %v260_v10 = vpop.f32.mrf.mxu3 }
  0xc9   :  { %v232_v9 = vadd.f32 %v422_v37, %v231_v8 }
  0xcb   :  { %v261_v11 = vadd.f32 %v260_v10, %v232_v9 }
  0xcd   :  { %v270_v12 = vmax.f32 %v261_v11, 0.0 }
  0xcf   :  { %278 = vst [vmem:[#allocation7 + $0x38] sm:$0xff] %v270_v12 }
  0xd0   :  { %291 = dma.vmem_to_hbm [thread:$0]  %s284_s26, 1024, %s286_s29, [#allocation4], %s502_s20, %s502_s20, %s503_s21  }
  0xd1   :  { %499 = dma.done.wait [#allocation4], 1024  }
  0xd2   :  { %500 = vsyncadd [#allocation4], 4294966272 }
  0xd3   :  { %296 = vsyncpa [#allocation3], 1 }
  0xd4   :  { %297 = vsyncpa [#allocation6], 1 }
  0xd5   :  { %298 = vsyncpa [#allocation4], 1 }

</bundles_post_ra>
